<compile_context>
chip_gen: v5e
topology: v5e:2x2
jax: 0.10.0
libtpu: 0.0.40
codegen_flags: <defaults>
</compile_context>

<pallas_src>
import functools
import math

import jax
import jax.numpy as jnp
from jax.experimental import pallas as pl
from jax.experimental.pallas import tpu as pltpu


def _round_up(x, n):
    return ((x + n - 1) // n) * n


def _vmem_capacity_bytes():
    """Physical per-core VMEM (128 MiB v5e/v6e, 64 MiB v7x); conservative fallback."""
    try:
        return int(pltpu.get_tpu_info().vmem_capacity_bytes)
    except Exception:
        return 64 * 1024 * 1024


# -----------------------------------------------------------------------------
# Kernels.  Each grid step produces one lane-dense (TILE_B, TILE_C) block of
#     s * cosine = s * (x/||x||) @ (w/||w||)^T
# The ArcFace margin itself is a per-row fixup applied in the wrapper.
# -----------------------------------------------------------------------------

def _cosine_kernel_fused(xn_ref, w_ref, out_ref, *, s, w_transposed):
    """Weight-row norms computed in-kernel (no extra HBM pass over W)."""
    w = w_ref[...]
    wf = w.astype(jnp.float32)
    if w_transposed:
        # w: (D, TILE_C) — natural (K, N) MXU layout, norms reduce over sublanes.
        inv_w = jax.lax.rsqrt(
            jnp.maximum(jnp.sum(wf * wf, axis=0, keepdims=True), 1e-24))   # (1, TILE_C)
        raw = jnp.dot(xn_ref[...], w, preferred_element_type=jnp.float32)  # (TB, TILE_C)
        scale = s * inv_w
    else:
        # w: (TILE_C, D) — contract last dims directly (no transposed copy of w).
        inv_w = jax.lax.rsqrt(
            jnp.maximum(jnp.sum(wf * wf, axis=1, keepdims=True), 1e-24))   # (TILE_C, 1)
        raw = jax.lax.dot_general(
            xn_ref[...], w,
            dimension_numbers=(((1,), (1,)), ((), ())),
            preferred_element_type=jnp.float32)                            # (TB, TILE_C)
        scale = s * jnp.transpose(inv_w)
    out_ref[...] = (raw * scale).astype(out_ref.dtype)


def _cosine_kernel_scaled(xn_ref, w_ref, scale_ref, out_ref, *, w_transposed):
    """Column scale s/||w|| precomputed in the wrapper and streamed as (1, TILE_C)."""
    if w_transposed:
        raw = jnp.dot(xn_ref[...], w_ref[...], preferred_element_type=jnp.float32)
    else:
        raw = jax.lax.dot_general(
            xn_ref[...], w_ref[...],
            dimension_numbers=(((1,), (1,)), ((), ())),
            preferred_element_type=jnp.float32)
    out_ref[...] = (raw * scale_ref[...]).astype(out_ref.dtype)


# -----------------------------------------------------------------------------
# Wrapper.
# -----------------------------------------------------------------------------

def arc_margin_product(x, weight, label, *, s=30.0, m=0.5, easy_margin=False,
                       weight_transposed=False, compute_dtype=None,
                       out_dtype=jnp.float32, tile_c=None, max_tile_b=512,
                       precompute_w_scale=None, return_padded=False):
    """ArcMarginProduct.forward as a (B, C)-tiled Pallas TPU kernel.

    x:      (B, in_features)
    weight: (out_features, in_features), or (in_features, out_features) when
            weight_transposed=True (stream W in natural (K, N) MXU layout).
    label:  (B,) int class indices.
    """
    B, D = x.shape
    if weight_transposed:
        D_w, C = weight.shape
    else:
        C, D_w = weight.shape
    assert D == D_w, "feature dims must match"

    cos_m = float(math.cos(m))
    sin_m = float(math.sin(m))
    th = float(math.cos(math.pi - m))
    mm = float(math.sin(math.pi - m) * m)

    mat_dtype = jnp.dtype(compute_dtype) if compute_dtype is not None else jnp.dtype(weight.dtype)
    w_bytes = mat_dtype.itemsize
    out_bytes = jnp.dtype(out_dtype).itemsize

    # --- hoisted x normalization (done once; not redone per weight tile) -----
    xf = x.astype(jnp.float32)
    inv_x = jax.lax.rsqrt(jnp.maximum(jnp.sum(xf * xf, axis=1, keepdims=True), 1e-24))
    xn = (xf * inv_x).astype(mat_dtype)

    w_mat = weight.astype(mat_dtype)

    # --- regime-dependent w-norm precompute (extra W pass only when compute-bound)
    if precompute_w_scale is None:
        precompute_w_scale = B >= 256

    # --- batch tiling ---------------------------------------------------------
    grid_b = max(1, -(-B // max_tile_b))
    tile_b = B if grid_b == 1 else _round_up(-(-B // grid_b), 8)
    b_pad = tile_b * grid_b
    if b_pad != B:
        xn = jnp.pad(xn, ((0, b_pad - B), (0, 0)))

    # --- class tiling (lane-dense, multiple of 128) ---------------------------
    c128 = _round_up(C, 128)
    if tile_c is None:
        target = 2 * 1024 * 1024                                   # ~2 MiB weight block
        t = max(128, min(2048, (target // max(D * w_bytes, 1)) // 128 * 128))
        if c128 >= 256:                                            # >=2 C-steps -> both v7x TCs busy
            t = min(t, max(128, (c128 // 2) // 128 * 128))
        tile_c = max(128, min(t, c128))
    else:
        tile_c = max(128, min(_round_up(tile_c, 128), c128))

    # --- VMEM budget, re-derived per chip generation --------------------------
    cap = _vmem_capacity_bytes()
    budget = int(0.80 * cap)          # ~51 MiB on v7x (64 MiB), ~102 MiB on v5e/v6e (128 MiB)

    def _need(tc):
        n = 2 * tc * D * w_bytes            # double-buffered weight tile
        n += 2 * tile_b * tc * out_bytes    # double-buffered output tile
        n += 2 * tile_b * D * w_bytes       # x block (worst case: double-buffered fallback)
        n += 2 * tc * 4                     # streamed column scale
        n += 4 * tile_b * tc * 4            # live f32 temporaries (raw / scaled)
        n += 2 * 1024 * 1024                # slack
        return n

    while tile_c > 128 and _need(tile_c) > budget:
        tile_c -= 128
    vmem_limit = int(min(max(int(_need(tile_c) * 1.25), 32 * 1024 * 1024), budget))

    c_pad = _round_up(C, tile_c)
    grid_c = c_pad // tile_c
    if c_pad != C:
        pad = ((0, 0), (0, c_pad - C)) if weight_transposed else ((0, c_pad - C), (0, 0))
        w_mat = jnp.pad(w_mat, pad)

    inputs = [xn, w_mat]
    if precompute_w_scale:
        wf32 = weight.astype(jnp.float32)
        sq = jnp.sum(wf32 * wf32, axis=0 if weight_transposed else 1)
        col_scale = (float(s) * jax.lax.rsqrt(jnp.maximum(sq, 1e-24))).reshape(1, C)
        if c_pad != C:
            col_scale = jnp.pad(col_scale, ((0, 0), (0, c_pad - C)))
        inputs.append(col_scale.astype(jnp.float32))
        kernel = functools.partial(_cosine_kernel_scaled, w_transposed=weight_transposed)
    else:
        kernel = functools.partial(_cosine_kernel_fused, s=float(s),
                                   w_transposed=weight_transposed)

    cost = pl.CostEstimate(
        flops=int(2 * b_pad * c_pad * D + 2 * b_pad * c_pad
                  + (0 if precompute_w_scale else grid_b * 2 * c_pad * D)),
        transcendentals=int(0 if precompute_w_scale else grid_b * c_pad),
        bytes_accessed=int(grid_b * c_pad * D * w_bytes + b_pad * D * w_bytes
                           + b_pad * c_pad * out_bytes
                           + (c_pad * 4 if precompute_w_scale else 0)),
    )

    x_map = lambda i, j: (i, 0)
    out_map = lambda i, j: (i, j)
    w_map = (lambda i, j: (0, j)) if weight_transposed else (lambda i, j: (j, 0))
    w_block = (D, tile_c) if weight_transposed else (tile_c, D)

    def _run(single_buffer_resident):
        if single_buffer_resident:
            # x never changes along the class axis -> single-buffer it; the saved
            # VMEM goes to a larger weight tile (most valuable on v7x's 64 MiB).
            x_spec = pl.BlockSpec((tile_b, D), x_map, pipeline_mode=pl.Buffered(1))
        else:
            x_spec = pl.BlockSpec((tile_b, D), x_map)
        in_specs = [x_spec, pl.BlockSpec(w_block, w_map)]
        if precompute_w_scale:
            in_specs.append(pl.BlockSpec((1, tile_c), lambda i, j: (0, j)))
        return pl.pallas_call(
            kernel,
            out_shape=jax.ShapeDtypeStruct((b_pad, c_pad), out_dtype),
            grid=(grid_b, grid_c),
            in_specs=in_specs,
            out_specs=pl.BlockSpec((tile_b, tile_c), out_map),
            compiler_params=pltpu.CompilerParams(
                dimension_semantics=("parallel", "parallel"),
                vmem_limit_bytes=vmem_limit,
            ),
            cost_estimate=cost,
        )(*inputs)

    try:
        logits = _run(single_buffer_resident=True)
    except Exception:
        # pl.Buffered(1) not supported by this jax/libtpu build -> default pipeline.
        logits = _run(single_buffer_resident=False)

    # --- per-row ArcFace margin fixup (B elements, applied only at label columns)
    rows = jnp.arange(B)
    lab = label.astype(jnp.int32)
    cos_lab = logits[rows, lab].astype(jnp.float32) / float(s)
    cos_lab = jnp.clip(cos_lab, -1.0, 1.0)
    sin_lab = jnp.sqrt(jnp.maximum(1.0 - cos_lab * cos_lab, 0.0))
    phi = cos_lab * cos_m - sin_lab * sin_m
    if easy_margin:
        phi = jnp.where(cos_lab > 0.0, phi, cos_lab)
    else:
        phi = jnp.where(cos_lab > th, phi, cos_lab - mm)
    logits = logits.at[rows, lab].set((float(s) * phi).astype(logits.dtype))

    if b_pad != B:
        logits = logits[:B]
    if not return_padded and c_pad != C:
        # NOTE: for very large C keep the padded logits (return_padded=True) and
        # mask in the downstream loss to avoid this extra (B, C) HBM pass.
        logits = logits[:, :C]
    return logits


# -----------------------------------------------------------------------------
# Pure-JAX reference mirroring the PyTorch module (with the same sqrt clamp).
# -----------------------------------------------------------------------------

def _reference(x, weight, label, *, s=30.0, m=0.5, easy_margin=False):
    cos_m, sin_m = math.cos(m), math.sin(m)
    th, mm = math.cos(math.pi - m), math.sin(math.pi - m) * m
    xn = x / jnp.maximum(jnp.linalg.norm(x, axis=1, keepdims=True), 1e-12)
    wn = weight / jnp.maximum(jnp.linalg.norm(weight, axis=1, keepdims=True), 1e-12)
    cosine = xn @ wn.T
    sine = jnp.sqrt(jnp.maximum(1.0 - cosine ** 2, 0.0))
    phi = cosine * cos_m - sine * sin_m
    if easy_margin:
        phi = jnp.where(cosine > 0.0, phi, cosine)
    else:
        phi = jnp.where(cosine > th, phi, cosine - mm)
    one_hot = jax.nn.one_hot(label, cosine.shape[1], dtype=cosine.dtype)
    return s * (one_hot * phi + (1.0 - one_hot) * cosine)


if __name__ == "__main__":
    key = jax.random.PRNGKey(0)

    def make_inputs(k, B, D, C):
        k_x, k_w, k_l = jax.random.split(k, 3)
        x = jax.random.normal(k_x, (B, D), dtype=jnp.float32)
        bound = math.sqrt(6.0 / (D + C))     # xavier_uniform_ equivalent (wrapper-side init)
        w = jax.random.uniform(k_w, (C, D), dtype=jnp.float32, minval=-bound, maxval=bound)
        lbl = jax.random.randint(k_l, (B,), 0, C, dtype=jnp.int32)
        return x, w, lbl

    k1, k2, _ = jax.random.split(key, 3)

    # Case 1: small module shapes, f32, fused in-kernel w-norms (C padded to one tile).
    B, D, C = 8, 32, 16
    x, w, lbl = make_inputs(k1, B, D, C)
    out = jax.block_until_ready(arc_margin_product(x, w, lbl, s=30.0, m=0.5))
    ref = _reference(x, w, lbl, s=30.0, m=0.5)
    assert out.shape == (B, C)
    assert jnp.allclose(out, ref, atol=1e-4, rtol=1e-4), "case1 mismatch vs reference"

    # Case 2: multi-tile class axis + precomputed column scale streamed into the kernel.
    B2, D2, C2 = 8, 32, 300
    x2, w2, lbl2 = make_inputs(k2, B2, D2, C2)
    out2 = jax.block_until_ready(
        arc_margin_product(x2, w2, lbl2, s=30.0, m=0.5, tile_c=128,
                           precompute_w_scale=True))
    ref2 = _reference(x2, w2, lbl2, s=30.0, m=0.5)
    assert out2.shape == (B2, C2)
    assert jnp.allclose(out2, ref2, atol=1e-4, rtol=1e-4), "case2 mismatch vs reference"

    # Case 3: transposed weight layout (natural (K, N) MXU layout) + easy_margin branch.
    out3 = jax.block_until_ready(
        arc_margin_product(x, jnp.transpose(w), lbl, s=30.0, m=0.5, easy_margin=True,
                           weight_transposed=True))
    ref3 = _reference(x, w, lbl, s=30.0, m=0.5, easy_margin=True)
    assert jnp.allclose(out3, ref3, atol=1e-4, rtol=1e-4), "case3 mismatch vs reference"

    # Case 4: bf16 matmul operands (f32 accumulation) — looser tolerance vs f32 reference.
    out4 = jax.block_until_ready(
        arc_margin_product(x, w, lbl, s=30.0, m=0.5, compute_dtype=jnp.bfloat16))
    assert out4.shape == (B, C)
    assert jnp.allclose(out4, ref, atol=0.25, rtol=0.05), "case4 (bf16) mismatch vs reference"

    print("KERNEL_OK")
</pallas_src>

<mosaic_0001>
module attributes {stable_mosaic.version = 11 : i64} {
  func.func @_cosine_kernel_fused(%arg0: i32, %arg1: i32, %arg2: memref<8x32xf32, #tpu.memory_space<vmem>>, %arg3: memref<128x32xf32, #tpu.memory_space<vmem>>, %arg4: memref<8x128xf32, #tpu.memory_space<vmem>>) attributes {dimension_semantics = [#tpu.dimension_semantics<parallel>, #tpu.dimension_semantics<parallel>], iteration_bounds = array<i64: 1, 1>, scalar_prefetch = 0 : i64, scratch_operands = 0 : i64, tpu.core_type = #tpu.core_type<tc>, window_params = [{pipeline_mode = #tpu.pipeline_mode<synchronous>, transform_indices = @transform_0, window_bounds = array<i64: 8, 32>}, {transform_indices = @transform_1, window_bounds = array<i64: 128, 32>}, {transform_indices = @transform_2, window_bounds = array<i64: 8, 128>}]} {
    %c0 = arith.constant 0 : index
    %c0_0 = arith.constant 0 : index
    %0 = vector.load %arg3[%c0, %c0_0] : memref<128x32xf32, #tpu.memory_space<vmem>>, vector<128x32xf32>
    %1 = arith.mulf %0, %0 : vector<128x32xf32>
    %cst = arith.constant dense<0.000000e+00> : vector<128xf32>
    %2 = vector.multi_reduction <add>, %1, %cst [1] : vector<128x32xf32> to vector<128xf32>
    %3 = vector.shape_cast %2 : vector<128xf32> to vector<128x1xf32>
    %cst_1 = arith.constant 1.000000e-24 : f32
    %4 = vector.broadcast %cst_1 : f32 to vector<128x1xf32>
    %5 = arith.maximumf %3, %4 : vector<128x1xf32>
    %6 = math.rsqrt %5 : vector<128x1xf32>
    %c0_2 = arith.constant 0 : index
    %c0_3 = arith.constant 0 : index
    %7 = vector.load %arg2[%c0_2, %c0_3] : memref<8x32xf32, #tpu.memory_space<vmem>>, vector<8x32xf32>
    %cst_4 = arith.constant dense<0.000000e+00> : vector<8x128xf32>
    %8 = tpu.matmul %7, %0, %cst_4 {dimension_numbers = #tpu.dot_dimension_numbers<[1], [1], [0], [0], [0, 0, 1, 0], [], []>} : vector<8x32xf32>, vector<128x32xf32>, vector<8x128xf32> -> vector<8x128xf32>
    %9 = tpu.transpose %6, [1, 0] : vector<128x1xf32> -> vector<1x128xf32>
    %cst_5 = arith.constant 3.000000e+01 : f32
    %10 = vector.broadcast %cst_5 : f32 to vector<1x128xf32>
    %11 = arith.mulf %10, %9 : vector<1x128xf32>
    %12 = vector.broadcast %11 : vector<1x128xf32> to vector<8x128xf32>
    %13 = arith.mulf %8, %12 : vector<8x128xf32>
    %c0_6 = arith.constant 0 : index
    %c0_7 = arith.constant 0 : index
    %14 = vector.load %arg4[%c0_6, %c0_7] : memref<8x128xf32, #tpu.memory_space<vmem>>, vector<8x128xf32>
    tpu.vector_store %arg4[%c0_6, %c0_7], %13 {strides = array<i32>} : memref<8x128xf32, #tpu.memory_space<vmem>>, vector<8x128xf32>,
    return
  }
  func.func @transform_0(%arg0: i32, %arg1: i32) -> (i32, i32) {
    %c0_i32 = arith.constant 0 : i32
    %c0_i32_0 = arith.constant 0 : i32
    return %arg0, %c0_i32 : i32, i32
  }
  func.func @transform_1(%arg0: i32, %arg1: i32) -> (i32, i32) {
    %c0_i32 = arith.constant 0 : i32
    %c0_i32_0 = arith.constant 0 : i32
    return %arg1, %c0_i32 : i32, i32
  }
  func.func @transform_2(%arg0: i32, %arg1: i32) -> (i32, i32) {
    %c0_i32 = arith.constant 0 : i32
    return %arg0, %arg1 : i32, i32
  }
}

module attributes {stable_mosaic.version = 11 : i64} {
  func.func @_cosine_kernel_fused(%arg0: i32, %arg1: i32, %arg2: memref<8x32xf32, #tpu.memory_space<vmem>>, %arg3: memref<128x32xf32, #tpu.memory_space<vmem>>, %arg4: memref<8x128xf32, #tpu.memory_space<vmem>>) attributes {dimension_semantics = [#tpu.dimension_semantics<parallel>, #tpu.dimension_semantics<parallel>], iteration_bounds = array<i64: 1, 1>, scalar_prefetch = 0 : i64, scratch_operands = 0 : i64, tpu.core_type = #tpu.core_type<tc>, window_params = [{transform_indices = @transform_0, window_bounds = array<i64: 8, 32>}, {transform_indices = @transform_1, window_bounds = array<i64: 128, 32>}, {transform_indices = @transform_2, window_bounds = array<i64: 8, 128>}]} {
    %c0 = arith.constant 0 : index
    %c0_0 = arith.constant 0 : index
    %0 = vector.load %arg3[%c0, %c0_0] : memref<128x32xf32, #tpu.memory_space<vmem>>, vector<128x32xf32>
    %1 = arith.mulf %0, %0 : vector<128x32xf32>
    %cst = arith.constant dense<0.000000e+00> : vector<128xf32>
    %2 = vector.multi_reduction <add>, %1, %cst [1] : vector<128x32xf32> to vector<128xf32>
    %3 = vector.shape_cast %2 : vector<128xf32> to vector<128x1xf32>
    %cst_1 = arith.constant 1.000000e-24 : f32
    %4 = vector.broadcast %cst_1 : f32 to vector<128x1xf32>
    %5 = arith.maximumf %3, %4 : vector<128x1xf32>
    %6 = math.rsqrt %5 : vector<128x1xf32>
    %c0_2 = arith.constant 0 : index
    %c0_3 = arith.constant 0 : index
    %7 = vector.load %arg2[%c0_2, %c0_3] : memref<8x32xf32, #tpu.memory_space<vmem>>, vector<8x32xf32>
    %cst_4 = arith.constant dense<0.000000e+00> : vector<8x128xf32>
    %8 = tpu.matmul %7, %0, %cst_4 {dimension_numbers = #tpu.dot_dimension_numbers<[1], [1], [0], [0], [0, 0, 1, 0], [], []>} : vector<8x32xf32>, vector<128x32xf32>, vector<8x128xf32> -> vector<8x128xf32>
    %9 = tpu.transpose %6, [1, 0] : vector<128x1xf32> -> vector<1x128xf32>
    %cst_5 = arith.constant 3.000000e+01 : f32
    %10 = vector.broadcast %cst_5 : f32 to vector<1x128xf32>
    %11 = arith.mulf %10, %9 : vector<1x128xf32>
    %12 = vector.broadcast %11 : vector<1x128xf32> to vector<8x128xf32>
    %13 = arith.mulf %8, %12 : vector<8x128xf32>
    %c0_6 = arith.constant 0 : index
    %c0_7 = arith.constant 0 : index
    %14 = vector.load %arg4[%c0_6, %c0_7] : memref<8x128xf32, #tpu.memory_space<vmem>>, vector<8x128xf32>
    tpu.vector_store %arg4[%c0_6, %c0_7], %13 {strides = array<i32>} : memref<8x128xf32, #tpu.memory_space<vmem>>, vector<8x128xf32>,
    return
  }
  func.func @transform_0(%arg0: i32, %arg1: i32) -> (i32, i32) {
    %c0_i32 = arith.constant 0 : i32
    %c0_i32_0 = arith.constant 0 : i32
    return %arg0, %c0_i32 : i32, i32
  }
  func.func @transform_1(%arg0: i32, %arg1: i32) -> (i32, i32) {
    %c0_i32 = arith.constant 0 : i32
    %c0_i32_0 = arith.constant 0 : i32
    return %arg1, %c0_i32 : i32, i32
  }
  func.func @transform_2(%arg0: i32, %arg1: i32) -> (i32, i32) {
    %c0_i32 = arith.constant 0 : i32
    return %arg0, %arg1 : i32, i32
  }
}

</mosaic_0001>

<bundles_post_ra>
// kernel: tpu_custom_call.1
= control target key start
LH: loop header
LB: loop body
LE: loop exit
PB: predicated region body
PF: predicated region fallthrough
CT: control target
= control target key end

     0   :  { %vm44_vm0 = vcmask 261120   ;;  %s602_s0 = inlined_call_operand.vmem [shape: f32[8,32], index: 0, kind: input, shape index: {}]   ;;  %s603_s1 = inlined_call_operand.vmem [shape: f32[128,32], index: 1, kind: input, shape index: {}]   ;;  %s604_s2 = inlined_call_operand.hbm [shape: f32[8,128], index: 2, kind: output, shape index: {}]  }
   0x1   :  { %v488_v0 = vld [vmem:[%s603_s1] sm:$0xff]  ;;  %v493_v1 = vld [vmem:[%s603_s1 + $0x10] sm:$0xff]  ;;  %v507_v5 = vld [vmem:[%s603_s1 + $0x8] sm:$0xff] }
   0x2   :  { %v28_v2 = vmul.f32 %v488_v0, %v488_v0  ;;  %v30_v3 = vmul.f32 %v493_v1, %v493_v1  ;;  %v502_v4 = vld [vmem:[%s603_s1 + $0x20] sm:$0xff]  ;;  %v512_v6 = vld [vmem:[%s603_s1 + $0x18] sm:$0xff]  ;;  %v521_v10 = vld [vmem:[%s603_s1 + $0x28] sm:$0xff]  ;;  %v29_v12 = vmul.f32 %v507_v5, %v507_v5 }
   0x3   :  { %v32_v7 = vmul.f32 %v502_v4, %v502_v4  ;;  %v31_v13 = vmul.f32 %v512_v6, %v512_v6  ;;  %v27_v14 = vld [vmem:[%s603_s1 + $0x78] sm:$0xff] }
   0x4   :  { %v45_v8 = vsel %vm44_vm0, %v28_v2, 0.0  ;;  %v51_v9 = vsel %vm44_vm0, %v30_v3, 0.0 }
   0x5   :  { %46 = vadd.xlane.f32.xlu0 %v45_v8  ;;  %52 = vadd.xlane.f32.xlu1 %v51_v9  ;;  %v57_v11 = vsel %vm44_vm0, %v32_v7, 0.0 }
   0x6   :  { %58 = vadd.xlane.f32.xlu2 %v57_v11 }
   0x7   :  { %7 = vsyncpa [#allocation3], 0  ;;  %v33_v15 = vmul.f32 %v521_v10, %v521_v10  ;;  %393 = vmatpush.xpose.msk.msra.mxu0 %vm44_vm0, %v27_v14  ;;  %v48_v16 = vsel %vm44_vm0, %v29_v12, 0.0  ;;  %v54_v17 = vsel %vm44_vm0, %v31_v13, 0.0  ;;  %v26_v18 = vld [vmem:[%s603_s1 + $0x70] sm:$0xff]  ;;  %v19_v21 = vld [vmem:[%s603_s1 + $0x38] sm:$0xff]  ;;  %v43_v46 = vmul.f32 %v27_v14, %v27_v14 }
   0x8   :  { %v18_v20 = vld [vmem:[%s603_s1 + $0x30] sm:$0xff]  ;;  %v20_v22 = vld [vmem:[%s603_s1 + $0x40] sm:$0xff]  ;;  %v35_v24 = vmul.f32 %v19_v21, %v19_v21  ;;  %v25_v25 = vld [vmem:[%s603_s1 + $0x68] sm:$0xff]  ;;  %v42_v42 = vmul.f32 %v26_v18, %v26_v18  ;;  %s384_s17 = sshll.u32 %s604_s2, 4  ;;  %s385_s17 = int_to_ptr.hbm [resolvable:$true] %s384_s17 }
   0x9   :  { %v60_v19 = vsel %vm44_vm0, %v33_v15, 0.0  ;;  %v34_v23 = vmul.f32 %v18_v20, %v18_v20  ;;  %v36_v26 = vmul.f32 %v20_v22, %v20_v22  ;;  %v24_v29 = vld [vmem:[%s603_s1 + $0x60] sm:$0xff]  ;;  %v22_v31 = vld [vmem:[%s603_s1 + $0x50] sm:$0xff]  ;;  %v21_v32 = vld [vmem:[%s603_s1 + $0x48] sm:$0xff]  ;;  %v41_v40 = vmul.f32 %v25_v25, %v25_v25 }
   0xa   :  { %v66_v28 = vsel %vm44_vm0, %v35_v24, 0.0  ;;  %v23_v33 = vld [vmem:[%s603_s1 + $0x58] sm:$0xff]  ;;  %v38_v34 = vmul.f32 %v22_v31, %v22_v31  ;;  %v37_v35 = vmul.f32 %v21_v32, %v21_v32  ;;  %v40_v41 = vmul.f32 %v24_v29, %v24_v29 }
   0xb   :  { %394 = vmatpush.xpose.msk.msra.mxu0 %vm44_vm0, %v26_v18  ;;  %v63_v27 = vsel %vm44_vm0, %v34_v23, 0.0  ;;  %v69_v30 = vsel %vm44_vm0, %v36_v26, 0.0  ;;  %v39_v36 = vmul.f32 %v23_v33, %v23_v33  ;;  %v84_v43 = vsel %vm44_vm0, %v41_v40, 0.0 }
   0xc   :  { %v75_v37 = vsel %vm44_vm0, %v38_v34, 0.0  ;;  %v72_v38 = vsel %vm44_vm0, %v37_v35, 0.0  ;;  %v81_v44 = vsel %vm44_vm0, %v40_v41, 0.0  ;;  %v87_v45 = vsel %vm44_vm0, %v42_v42, 0.0 }
   0xd   :  { %49 = vadd.xlane.f32.xlu0 %v48_v16  ;;  %55 = vadd.xlane.f32.xlu1 %v54_v17  ;;  %v78_v39 = vsel %vm44_vm0, %v39_v36, 0.0  ;;  %v90_v47 = vsel %vm44_vm0, %v43_v46, 0.0 }
   0xe   :  { %61 = vadd.xlane.f32.xlu2 %v60_v19  ;;  %v269_v19 = vld [vmem:[%s602_s0] sm:$0xff]  ;;  %s469_s0 = smov [#allocation2]  }
   0xf   :  { %395 = vmatpush.xpose.msk.msra.mxu0 %vm44_vm0, %v25_v25  ;;  %s382_s14 = sshll.u32 %s469_s0, 4  ;;  %s383_s14 = int_to_ptr.vmem [resolvable:$true] %s382_s14 }
  0x13   :  { %396 = vmatpush.xpose.msk.msra.mxu0 %vm44_vm0, %v24_v29 }
  0x15   :  { %64 = vadd.xlane.f32.xlu0 %v63_v27  ;;  %67 = vadd.xlane.f32.xlu1 %v66_v28 }
  0x16   :  { %70 = vadd.xlane.f32.xlu2 %v69_v30 }
  0x17   :  { %397 = vmatpush.xpose.msk.msra.mxu0 %vm44_vm0, %v23_v33 }
  0x1b   :  { %398 = vmatpush.xpose.msk.msra.mxu0 %vm44_vm0, %v22_v31 }
  0x1d   :  { %76 = vadd.xlane.f32.xlu1 %v75_v37  ;;  %73 = vadd.xlane.f32.xlu0 %v72_v38 }
  0x1e   :  { %79 = vadd.xlane.f32.xlu2 %v78_v39 }
  0x1f   :  { %399 = vmatpush.xpose.msk.msra.mxu0 %vm44_vm0, %v21_v32 }
  0x23   :  { %400 = vmatpush.xpose.msk.msra.mxu0 %vm44_vm0, %v20_v22 }
  0x25   :  { %85 = vadd.xlane.f32.xlu1 %v84_v43  ;;  %82 = vadd.xlane.f32.xlu0 %v81_v44 }
  0x26   :  { %88 = vadd.xlane.f32.xlu2 %v87_v45 }
  0x27   :  { %401 = vmatpush.xpose.msk.msra.mxu0 %vm44_vm0, %v19_v21 }
  0x2b   :  { %402 = vmatpush.xpose.msk.msra.mxu0 %vm44_vm0, %v18_v20 }
  0x2d   :  { %91 = vadd.xlane.f32.xlu0 %v90_v47 }
  0x2f   :  { %403 = vmatpush.xpose.msk.msra.mxu0 %vm44_vm0, %v521_v10 }
  0x33   :  { %404 = vmatpush.xpose.msk.msra.mxu0 %vm44_vm0, %v502_v4 }
  0x37   :  { %405 = vmatpush.xpose.msk.msra.mxu0 %vm44_vm0, %v512_v6 }
  0x3b   :  { %406 = vmatpush.xpose.msk.msra.mxu0 %vm44_vm0, %v493_v1 }
  0x3f   :  { %407 = vmatpush.xpose.msk.msra.mxu0 %vm44_vm0, %v507_v5 }
  0x43   :  { %408 = vmatpush.xpose.msk.msra.mxu0 %vm44_vm0, %v488_v0 }
  0x46   :  { %409 = vmatmul.msk.f32.vlgmr.msra.gmra.mxu0 %vm44_vm0, %v269_v19 }
  0x78   :  { %v47_v48 = vpop.xlane.xlu0 %46  ;;  %v53_v49 = vpop.xlane.xlu1 %52 }
  0x79   :  { %v93_v50 = vmax.f32 %v47_v48, 1e-24  ;;  %v95_v51 = vmax.f32 %v53_v49, 1e-24  ;;  %v59_v60 = vpop.xlane.xlu2 %58 }
  0x7a   :  { %v97_v3 = vmax.f32 %v59_v60, 1e-24 }
  0x7b   :  { %411 = vrsqrt.f32 %v93_v50  ;;  %vm115_vm2 = vweird.f32 %v93_v50  ;;  %vm135_vm7 = vweird.f32 %v95_v51 }
  0x7c   :  { %413 = vrsqrt.f32 %v95_v51  ;;  %vm155_vm13 = vweird.f32 %v97_v3 }
  0x80   :  { %v50_v52 = vpop.xlane.xlu0 %49  ;;  %v56_v53 = vpop.xlane.xlu1 %55 }
  0x81   :  { %v412_v54 = vpop.eup %411  ;;  %v94_v55 = vmax.f32 %v50_v52, 1e-24  ;;  %v96_v57 = vmax.f32 %v56_v53, 1e-24  ;;  %v62_v12 = vpop.xlane.xlu2 %61 }
  0x82   :  { %v110_v56 = vmul.f32 %v412_v54, %v93_v50  ;;  %v414_v59 = vpop.eup %413  ;;  %vm116_vm1 = vweird.f32 %v412_v54  ;;  %v98_v14 = vmax.f32 %v62_v12, 1e-24 }
  0x83   :  { %415 = vrsqrt.f32 %v94_v55  ;;  %v130_v62 = vmul.f32 %v414_v59, %v95_v51  ;;  %vm117_vm3 = vmor %vm115_vm2, %vm116_vm1  ;;  %vm125_vm5 = vweird.f32 %v94_v55  ;;  %vm136_vm8 = vweird.f32 %v414_v59 }
  0x84   :  { %v111_v58 = vmul.f32 %v412_v54, %v110_v56  ;;  %417 = vrsqrt.f32 %v96_v57  ;;  %vm137_vm9 = vmor %vm135_vm7, %vm136_vm8  ;;  %vm145_vm10 = vweird.f32 %v96_v57  ;;  %vm165_vm0 = vweird.f32 %v98_v14 }
  0x85   :  { %v131_v4 = vmul.f32 %v414_v59, %v130_v62  ;;  %419 = vrsqrt.f32 %v97_v3 }
  0x86   :  { %v112_v61 = vmul.f32 0.5, %v111_v58  ;;  %421 = vrsqrt.f32 %v98_v14 }
  0x87   :  { %v132_v9 = vmul.f32 0.5, %v131_v4 }
  0x88   :  { %v113_v63 = vsub.f32 1.5, %v112_v61  ;;  %v65_v22 = vpop.xlane.xlu0 %64  ;;  %v68_v31 = vpop.xlane.xlu1 %67 }
  0x89   :  { %v416_v0 = vpop.eup %415  ;;  %v133_v15 = vsub.f32 1.5, %v132_v9  ;;  %v99_v24 = vmax.f32 %v65_v22, 1e-24  ;;  %v100_v33 = vmax.f32 %v68_v31, 1e-24  ;;  %v71_v40 = vpop.xlane.xlu2 %70 }
  0x8a   :  { %v120_v1 = vmul.f32 %v416_v0, %v94_v55  ;;  %v114_v2 = vmul.f32 %v412_v54, %v113_v63  ;;  %v418_v7 = vpop.eup %417  ;;  %vm126_vm4 = vweird.f32 %v416_v0  ;;  %v101_v42 = vmax.f32 %v71_v40, 1e-24 }
  0x8b   :  { %v140_v11 = vmul.f32 %v418_v7, %v96_v57  ;;  %vm127_vm6 = vmor %vm125_vm5, %vm126_vm4  ;;  %v420_v18 = vpop.eup %419  ;;  %v134_v23 = vmul.f32 %v414_v59, %v133_v15  ;;  %vm146_vm11 = vweird.f32 %v418_v7  ;;  %423 = vrsqrt.f32 %v99_v24 }
  0x8c   :  { %v121_v5 = vmul.f32 %v416_v0, %v120_v1  ;;  %v118_v6 = vsel %vm117_vm3, %v412_v54, %v114_v2  ;;  %v150_v21 = vmul.f32 %v420_v18, %v97_v3  ;;  %v422_v28 = vpop.eup %421  ;;  %vm147_vm12 = vmor %vm145_vm10, %vm146_vm11  ;;  %vm156_vm14 = vweird.f32 %v420_v18 }
  0x8d   :  { %341 = vxpose.xlu1.b32.start [1/16] (narrow) %v118_v6, 8  ;;  %v141_v16 = vmul.f32 %v418_v7, %v140_v11  ;;  %v138_v27 = vsel %vm137_vm9, %v414_v59, %v134_v23  ;;  %v160_v30 = vmul.f32 %v422_v28, %v98_v14  ;;  %425 = vrsqrt.f32 %v100_v33  ;;  %vm157_vm15 = vmor %vm155_vm13, %vm156_vm14 }
  0x8e   :  { %v122_v8 = vmul.f32 0.5, %v121_v5  ;;  %v151_v26 = vmul.f32 %v420_v18, %v150_v21  ;;  %vm166_vm1 = vweird.f32 %v422_v28  ;;  %427 = vrsqrt.f32 %v101_v42 }
  0x8f   :  { %v142_v20 = vmul.f32 0.5, %v141_v16  ;;  %v161_v35 = vmul.f32 %v422_v28, %v160_v30  ;;  %vm167_vm2 = vmor %vm165_vm0, %vm166_vm1  ;;  %vm175_vm3 = vweird.f32 %v99_v24  ;;  %vm195_vm9 = vweird.f32 %v101_v42 }
  0x90   :  { %v123_v10 = vsub.f32 1.5, %v122_v8  ;;  %v152_v29 = vmul.f32 0.5, %v151_v26  ;;  %v74_v49 = vpop.xlane.xlu0 %73  ;;  %v77_v58 = vpop.xlane.xlu1 %76 }
  0x91   :  { %v143_v25 = vsub.f32 1.5, %v142_v20  ;;  %v424_v37 = vpop.eup %423  ;;  %v162_v38 = vmul.f32 0.5, %v161_v35  ;;  %v102_v51 = vmax.f32 %v74_v49, 1e-24  ;;  %v103_v60 = vmax.f32 %v77_v58, 1e-24  ;;  %v80_v3 = vpop.xlane.xlu2 %79 }
  0x92   :  { %v124_v13 = vmul.f32 %v416_v0, %v123_v10  ;;  %v153_v34 = vsub.f32 1.5, %v152_v29  ;;  %v170_v39 = vmul.f32 %v424_v37, %v99_v24  ;;  %vm176_vm4 = vweird.f32 %v424_v37 }
  0x93   :  { %v144_v32 = vmul.f32 %v418_v7, %v143_v25  ;;  %v163_v43 = vsub.f32 1.5, %v162_v38  ;;  %v426_v46 = vpop.eup %425  ;;  %429 = vrsqrt.f32 %v102_v51  ;;  %vm177_vm5 = vmor %vm175_vm3, %vm176_vm4  ;;  %v104_v5 = vmax.f32 %v80_v3, 1e-24 }
  0x94   :  { %v128_v17 = vsel %vm127_vm6, %v416_v0, %v124_v13  ;;  %v154_v41 = vmul.f32 %v420_v18, %v153_v34  ;;  %v171_v44 = vmul.f32 %v424_v37, %v170_v39  ;;  %v180_v48 = vmul.f32 %v426_v46, %v100_v33  ;;  %v428_v55 = vpop.eup %427 }
  0x95   :  { %342 = vxpose.xlu1.b32.cont [2/16] (narrow) %v128_v17, 8  ;;  %v148_v36 = vsel %vm147_vm12, %v418_v7, %v144_v32  ;;  %v164_v50 = vmul.f32 %v422_v28, %v163_v43  ;;  %v190_v57 = vmul.f32 %v428_v55, %v101_v42  ;;  %vm185_vm6 = vweird.f32 %v100_v33 }
  0x96   :  { %v158_v45 = vsel %vm157_vm15, %v420_v18, %v154_v41  ;;  %v172_v47 = vmul.f32 0.5, %v171_v44  ;;  %v181_v53 = vmul.f32 %v426_v46, %v180_v48  ;;  %vm186_vm7 = vweird.f32 %v426_v46 }
  0x97   :  { %v168_v54 = vsel %vm167_vm2, %v422_v28, %v164_v50  ;;  %v191_v62 = vmul.f32 %v428_v55, %v190_v57  ;;  %431 = vrsqrt.f32 %v103_v60  ;;  %vm187_vm8 = vmor %vm185_vm6, %vm186_vm7  ;;  %vm196_vm10 = vweird.f32 %v428_v55 }
  0x98   :  { %v173_v52 = vsub.f32 1.5, %v172_v47  ;;  %v182_v56 = vmul.f32 0.5, %v181_v53  ;;  %433 = vrsqrt.f32 %v104_v5  ;;  %v83_v12 = vpop.xlane.xlu0 %82  ;;  %vm197_vm11 = vmor %vm195_vm9, %vm196_vm10  ;;  %vm205_vm12 = vweird.f32 %v102_v51  ;;  %v86_v20 = vpop.xlane.xlu1 %85 }
  0x99   :  { %v430_v0 = vpop.eup %429  ;;  %v192_v1 = vmul.f32 0.5, %v191_v62  ;;  %v105_v14 = vmax.f32 %v83_v12, 1e-24  ;;  %v106_v23 = vmax.f32 %v86_v20, 1e-24  ;;  %vm215_vm15 = vweird.f32 %v103_v60  ;;  %v89_v30 = vpop.xlane.xlu2 %88 }
  0x9a   :  { %v174_v59 = vmul.f32 %v424_v37, %v173_v52  ;;  %v183_v61 = vsub.f32 1.5, %v182_v56  ;;  %v200_v2 = vmul.f32 %v430_v0, %v102_v51  ;;  %vm206_vm13 = vweird.f32 %v430_v0 }
  0x9b   :  { %v193_v6 = vsub.f32 1.5, %v192_v1  ;;  %435 = vrsqrt.f32 %v105_v14  ;;  %vm207_vm14 = vmor %vm205_vm12, %vm206_vm13  ;;  %v107_v32 = vmax.f32 %v89_v30, 1e-24  ;;  %vm225_vm2 = vweird.f32 %v104_v5 }
  0x9c   :  { %v178_v63 = vsel %vm177_vm5, %v424_v37, %v174_v59  ;;  %v184_v4 = vmul.f32 %v426_v46, %v183_v61  ;;  %v201_v7 = vmul.f32 %v430_v0, %v200_v2  ;;  %437 = vrsqrt.f32 %v106_v23 }
  0x9d   :  { %343 = vxpose.xlu1.b32.cont [3/16] (narrow) %v138_v27, 8  ;;  %v432_v9 = vpop.eup %431  ;;  %v194_v13 = vmul.f32 %v428_v55, %v193_v6  ;;  %439 = vrsqrt.f32 %v107_v32  ;;  %vm235_vm5 = vweird.f32 %v105_v14 }
  0x9e   :  { %v188_v8 = vsel %vm187_vm8, %v426_v46, %v184_v4  ;;  %v210_v10 = vmul.f32 %v432_v9, %v103_v60  ;;  %v202_v11 = vmul.f32 0.5, %v201_v7  ;;  %v434_v18 = vpop.eup %433  ;;  %vm216_vm0 = vweird.f32 %v432_v9 }
  0x9f   :  { %v198_v17 = vsel %vm197_vm11, %v428_v55, %v194_v13  ;;  %v220_v21 = vmul.f32 %v434_v18, %v104_v5  ;;  %vm217_vm1 = vmor %vm215_vm15, %vm216_vm0  ;;  %vm226_vm3 = vweird.f32 %v434_v18  ;;  %vm245_vm8 = vweird.f32 %v106_v23 }
  0xa0   :  { %v211_v15 = vmul.f32 %v432_v9, %v210_v10  ;;  %v203_v16 = vsub.f32 1.5, %v202_v11  ;;  %v92_v39 = vpop.xlane.xlu0 %91  ;;  %vm227_vm4 = vmor %vm225_vm2, %vm226_vm3  ;;  %vm255_vm11 = vweird.f32 %v107_v32 }
  0xa1   :  { %v221_v25 = vmul.f32 %v434_v18, %v220_v21  ;;  %v436_v27 = vpop.eup %435  ;;  %v108_v41 = vmax.f32 %v92_v39, 1e-24 }
  0xa2   :  { %v212_v19 = vmul.f32 0.5, %v211_v15  ;;  %v204_v22 = vmul.f32 %v430_v0, %v203_v16  ;;  %v230_v29 = vmul.f32 %v436_v27, %v105_v14  ;;  %vm236_vm6 = vweird.f32 %v436_v27 }
  0xa3   :  { %v222_v28 = vmul.f32 0.5, %v221_v25  ;;  %441 = vrsqrt.f32 %v108_v41  ;;  %vm237_vm7 = vmor %vm235_vm5, %vm236_vm6 }
  0xa4   :  { %v213_v24 = vsub.f32 1.5, %v212_v19  ;;  %v208_v26 = vsel %vm207_vm14, %v430_v0, %v204_v22  ;;  %v231_v34 = vmul.f32 %v436_v27, %v230_v29  ;;  %vm265_vm14 = vweird.f32 %v108_v41 }
  0xa5   :  { %344 = vxpose.xlu1.b32.cont [4/16] (narrow) %v148_v36, 8  ;;  %v223_v33 = vsub.f32 1.5, %v222_v28  ;;  %v438_v36 = vpop.eup %437 }
  0xa6   :  { %v214_v31 = vmul.f32 %v432_v9, %v213_v24  ;;  %v240_v37 = vmul.f32 %v438_v36, %v106_v23  ;;  %v232_v38 = vmul.f32 0.5, %v231_v34  ;;  %vm246_vm9 = vweird.f32 %v438_v36 }
  0xa7   :  { %v224_v40 = vmul.f32 %v434_v18, %v223_v33  ;;  %vm247_vm10 = vmor %vm245_vm8, %vm246_vm9 }
  0xa8   :  { %v218_v35 = vsel %vm217_vm1, %v432_v9, %v214_v31  ;;  %v241_v42 = vmul.f32 %v438_v36, %v240_v37  ;;  %v233_v43 = vsub.f32 1.5, %v232_v38 }
  0xa9   :  { %v228_v44 = vsel %vm227_vm4, %v434_v18, %v224_v40 }
  0xaa   :  { %v242_v46 = vmul.f32 0.5, %v241_v42  ;;  %v234_v48 = vmul.f32 %v436_v27, %v233_v43 }
  0xac   :  { %v243_v49 = vsub.f32 1.5, %v242_v46  ;;  %v238_v51 = vsel %vm237_vm7, %v436_v27, %v234_v48 }
  0xad   :  { %345 = vxpose.xlu1.b32.cont [5/16] (narrow) %v158_v45, 8  ;;  %v440_v45 = vpop.eup %439 }
  0xae   :  { %v250_v47 = vmul.f32 %v440_v45, %v107_v32  ;;  %v442_v52 = vpop.eup %441  ;;  %v244_v55 = vmul.f32 %v438_v36, %v243_v49  ;;  %vm256_vm12 = vweird.f32 %v440_v45 }
  0xaf   :  { %vm257_vm13 = vmor %vm255_vm11, %vm256_vm12  ;;  %vm266_vm15 = vweird.f32 %v442_v52 }
  0xb0   :  { %v251_v50 = vmul.f32 %v440_v45, %v250_v47  ;;  %v248_v58 = vsel %vm247_vm10, %v438_v36, %v244_v55  ;;  %vm267_vm0 = vmor %vm265_vm14, %vm266_vm15 }
  0xb2   :  { %v252_v53 = vmul.f32 0.5, %v251_v50 }
  0xb4   :  { %v253_v56 = vsub.f32 1.5, %v252_v53 }
  0xb5   :  { %346 = vxpose.xlu1.b32.cont [6/16] (narrow) %v168_v54, 8  ;;  %v260_v54 = vmul.f32 %v442_v52, %v108_v41 }
  0xb6   :  { %v254_v60 = vmul.f32 %v440_v45, %v253_v56 }
  0xb7   :  { %v261_v57 = vmul.f32 %v442_v52, %v260_v54 }
  0xb8   :  { %v258_v62 = vsel %vm257_vm13, %v440_v45, %v254_v60 }
  0xb9   :  { %v262_v59 = vmul.f32 0.5, %v261_v57 }
  0xbb   :  { %v263_v61 = vsub.f32 1.5, %v262_v59 }
  0xbd   :  { %347 = vxpose.xlu1.b32.cont [7/16] (narrow) %v178_v63, 8  ;;  %v264_v63 = vmul.f32 %v442_v52, %v263_v61 }
  0xbf   :  { %v268_v0 = vsel %vm267_vm0, %v442_v52, %v264_v63 }
  0xc3   :  { %v338_v3 = vpop.f32.mrf.mxu0 }
  0xc5   :  { %348 = vxpose.xlu1.b32.cont [8/16] (narrow) %v188_v8, 8 }
  0xcd   :  { %349 = vxpose.xlu1.b32.cont [9/16] (narrow) %v198_v17, 8 }
  0xd5   :  { %350 = vxpose.xlu1.b32.cont [10/16] (narrow) %v208_v26, 8 }
  0xdd   :  { %351 = vxpose.xlu1.b32.cont [11/16] (narrow) %v218_v35, 8 }
  0xe5   :  { %352 = vxpose.xlu1.b32.cont [12/16] (narrow) %v228_v44, 8 }
  0xed   :  { %353 = vxpose.xlu1.b32.cont [13/16] (narrow) %v238_v51, 8 }
  0xf5   :  { %354 = vxpose.xlu1.b32.cont [14/16] (narrow) %v248_v58, 8 }
  0xfd   :  { %355 = vxpose.xlu1.b32.cont [15/16] (narrow) %v258_v62, 8 }
 0x105   :  { %356 = vxpose.xlu1.b32.end [16/16] (narrow) %v268_v0, 8 }
 0x131   :  { %v357_v1 = vpop.trf.xlu1 }
 0x132   :  { %v373_v2 = vmul.f32 30.0, %v357_v1 }
 0x134   :  { %v374_v4 = vperm.slane %v373_v2, 0 }
 0x136   :  { %v375_v5 = vmul.f32 %v374_v4, %v338_v3 }
 0x138   :  { %376 = vst [vmem:[#allocation2] sm:$0xff] %v375_v5 }
 0x139   :  { %387 = dma.vmem_to_hbm [thread:$0]  %s383_s14, 128, %s385_s17, [#allocation3]  }
 0x13a   :  { %467 = dma.done.wait [#allocation3], 128  }
 0x13b   :  { %468 = vsyncadd [#allocation3], 4294967168 }
 0x13c   :  { %392 = vsyncpa [#allocation3], 1 }

// kernel: tpu_custom_call.1
= control target key start
LH: loop header
LB: loop body
LE: loop exit
PB: predicated region body
PF: predicated region fallthrough
CT: control target
= control target key end

     0   :  { %vm44_vm0 = vcmask 261120   ;;  %s602_s0 = inlined_call_operand.vmem [shape: f32[8,32], index: 0, kind: input, shape index: {}]   ;;  %s603_s1 = inlined_call_operand.vmem [shape: f32[128,32], index: 1, kind: input, shape index: {}]   ;;  %s604_s2 = inlined_call_operand.hbm [shape: f32[8,128], index: 2, kind: output, shape index: {}]  }
   0x1   :  { %v488_v0 = vld [vmem:[%s603_s1] sm:$0xff]  ;;  %v493_v1 = vld [vmem:[%s603_s1 + $0x10] sm:$0xff]  ;;  %v507_v5 = vld [vmem:[%s603_s1 + $0x8] sm:$0xff] }
   0x2   :  { %v28_v2 = vmul.f32 %v488_v0, %v488_v0  ;;  %v30_v3 = vmul.f32 %v493_v1, %v493_v1  ;;  %v502_v4 = vld [vmem:[%s603_s1 + $0x20] sm:$0xff]  ;;  %v512_v6 = vld [vmem:[%s603_s1 + $0x18] sm:$0xff]  ;;  %v521_v10 = vld [vmem:[%s603_s1 + $0x28] sm:$0xff]  ;;  %v29_v12 = vmul.f32 %v507_v5, %v507_v5 }
   0x3   :  { %v32_v7 = vmul.f32 %v502_v4, %v502_v4  ;;  %v31_v13 = vmul.f32 %v512_v6, %v512_v6  ;;  %v27_v14 = vld [vmem:[%s603_s1 + $0x78] sm:$0xff] }
   0x4   :  { %v45_v8 = vsel %vm44_vm0, %v28_v2, 0.0  ;;  %v51_v9 = vsel %vm44_vm0, %v30_v3, 0.0 }
   0x5   :  { %46 = vadd.xlane.f32.xlu0 %v45_v8  ;;  %52 = vadd.xlane.f32.xlu1 %v51_v9  ;;  %v57_v11 = vsel %vm44_vm0, %v32_v7, 0.0 }
   0x6   :  { %58 = vadd.xlane.f32.xlu2 %v57_v11 }
   0x7   :  { %7 = vsyncpa [#allocation3], 0  ;;  %v33_v15 = vmul.f32 %v521_v10, %v521_v10  ;;  %393 = vmatpush.xpose.msk.msra.mxu0 %vm44_vm0, %v27_v14  ;;  %v48_v16 = vsel %vm44_vm0, %v29_v12, 0.0  ;;  %v54_v17 = vsel %vm44_vm0, %v31_v13, 0.0  ;;  %v26_v18 = vld [vmem:[%s603_s1 + $0x70] sm:$0xff]  ;;  %v19_v21 = vld [vmem:[%s603_s1 + $0x38] sm:$0xff]  ;;  %v43_v46 = vmul.f32 %v27_v14, %v27_v14 }
   0x8   :  { %v18_v20 = vld [vmem:[%s603_s1 + $0x30] sm:$0xff]  ;;  %v20_v22 = vld [vmem:[%s603_s1 + $0x40] sm:$0xff]  ;;  %v35_v24 = vmul.f32 %v19_v21, %v19_v21  ;;  %v25_v25 = vld [vmem:[%s603_s1 + $0x68] sm:$0xff]  ;;  %v42_v42 = vmul.f32 %v26_v18, %v26_v18  ;;  %s384_s17 = sshll.u32 %s604_s2, 4  ;;  %s385_s17 = int_to_ptr.hbm [resolvable:$true] %s384_s17 }
   0x9   :  { %v60_v19 = vsel %vm44_vm0, %v33_v15, 0.0  ;;  %v34_v23 = vmul.f32 %v18_v20, %v18_v20  ;;  %v36_v26 = vmul.f32 %v20_v22, %v20_v22  ;;  %v24_v29 = vld [vmem:[%s603_s1 + $0x60] sm:$0xff]  ;;  %v22_v31 = vld [vmem:[%s603_s1 + $0x50] sm:$0xff]  ;;  %v21_v32 = vld [vmem:[%s603_s1 + $0x48] sm:$0xff]  ;;  %v41_v40 = vmul.f32 %v25_v25, %v25_v25 }
   0xa   :  { %v66_v28 = vsel %vm44_vm0, %v35_v24, 0.0  ;;  %v23_v33 = vld [vmem:[%s603_s1 + $0x58] sm:$0xff]  ;;  %v38_v34 = vmul.f32 %v22_v31, %v22_v31  ;;  %v37_v35 = vmul.f32 %v21_v32, %v21_v32  ;;  %v40_v41 = vmul.f32 %v24_v29, %v24_v29 }
   0xb   :  { %394 = vmatpush.xpose.msk.msra.mxu0 %vm44_vm0, %v26_v18  ;;  %v63_v27 = vsel %vm44_vm0, %v34_v23, 0.0  ;;  %v69_v30 = vsel %vm44_vm0, %v36_v26, 0.0  ;;  %v39_v36 = vmul.f32 %v23_v33, %v23_v33  ;;  %v84_v43 = vsel %vm44_vm0, %v41_v40, 0.0 }
   0xc   :  { %v75_v37 = vsel %vm44_vm0, %v38_v34, 0.0  ;;  %v72_v38 = vsel %vm44_vm0, %v37_v35, 0.0  ;;  %v81_v44 = vsel %vm44_vm0, %v40_v41, 0.0  ;;  %v87_v45 = vsel %vm44_vm0, %v42_v42, 0.0 }
   0xd   :  { %49 = vadd.xlane.f32.xlu0 %v48_v16  ;;  %55 = vadd.xlane.f32.xlu1 %v54_v17  ;;  %v78_v39 = vsel %vm44_vm0, %v39_v36, 0.0  ;;  %v90_v47 = vsel %vm44_vm0, %v43_v46, 0.0 }
   0xe   :  { %61 = vadd.xlane.f32.xlu2 %v60_v19  ;;  %v269_v19 = vld [vmem:[%s602_s0] sm:$0xff]  ;;  %s469_s0 = smov [#allocation2]  }
   0xf   :  { %395 = vmatpush.xpose.msk.msra.mxu0 %vm44_vm0, %v25_v25  ;;  %s382_s14 = sshll.u32 %s469_s0, 4  ;;  %s383_s14 = int_to_ptr.vmem [resolvable:$true] %s382_s14 }
  0x13   :  { %396 = vmatpush.xpose.msk.msra.mxu0 %vm44_vm0, %v24_v29 }
  0x15   :  { %64 = vadd.xlane.f32.xlu0 %v63_v27  ;;  %67 = vadd.xlane.f32.xlu1 %v66_v28 }
  0x16   :  { %70 = vadd.xlane.f32.xlu2 %v69_v30 }
  0x17   :  { %397 = vmatpush.xpose.msk.msra.mxu0 %vm44_vm0, %v23_v33 }
  0x1b   :  { %398 = vmatpush.xpose.msk.msra.mxu0 %vm44_vm0, %v22_v31 }
  0x1d   :  { %76 = vadd.xlane.f32.xlu1 %v75_v37  ;;  %73 = vadd.xlane.f32.xlu0 %v72_v38 }
  0x1e   :  { %79 = vadd.xlane.f32.xlu2 %v78_v39 }
  0x1f   :  { %399 = vmatpush.xpose.msk.msra.mxu0 %vm44_vm0, %v21_v32 }
  0x23   :  { %400 = vmatpush.xpose.msk.msra.mxu0 %vm44_vm0, %v20_v22 }
  0x25   :  { %85 = vadd.xlane.f32.xlu1 %v84_v43  ;;  %82 = vadd.xlane.f32.xlu0 %v81_v44 }
  0x26   :  { %88 = vadd.xlane.f32.xlu2 %v87_v45 }
  0x27   :  { %401 = vmatpush.xpose.msk.msra.mxu0 %vm44_vm0, %v19_v21 }
  0x2b   :  { %402 = vmatpush.xpose.msk.msra.mxu0 %vm44_vm0, %v18_v20 }
  0x2d   :  { %91 = vadd.xlane.f32.xlu0 %v90_v47 }
  0x2f   :  { %403 = vmatpush.xpose.msk.msra.mxu0 %vm44_vm0, %v521_v10 }
  0x33   :  { %404 = vmatpush.xpose.msk.msra.mxu0 %vm44_vm0, %v502_v4 }
  0x37   :  { %405 = vmatpush.xpose.msk.msra.mxu0 %vm44_vm0, %v512_v6 }
  0x3b   :  { %406 = vmatpush.xpose.msk.msra.mxu0 %vm44_vm0, %v493_v1 }
  0x3f   :  { %407 = vmatpush.xpose.msk.msra.mxu0 %vm44_vm0, %v507_v5 }
  0x43   :  { %408 = vmatpush.xpose.msk.msra.mxu0 %vm44_vm0, %v488_v0 }
  0x46   :  { %409 = vmatmul.msk.f32.vlgmr.msra.gmra.mxu0 %vm44_vm0, %v269_v19 }
  0x78   :  { %v47_v48 = vpop.xlane.xlu0 %46  ;;  %v53_v49 = vpop.xlane.xlu1 %52 }
  0x79   :  { %v93_v50 = vmax.f32 %v47_v48, 1e-24  ;;  %v95_v51 = vmax.f32 %v53_v49, 1e-24  ;;  %v59_v60 = vpop.xlane.xlu2 %58 }
  0x7a   :  { %v97_v3 = vmax.f32 %v59_v60, 1e-24 }
  0x7b   :  { %411 = vrsqrt.f32 %v93_v50  ;;  %vm115_vm2 = vweird.f32 %v93_v50  ;;  %vm135_vm7 = vweird.f32 %v95_v51 }
  0x7c   :  { %413 = vrsqrt.f32 %v95_v51  ;;  %vm155_vm13 = vweird.f32 %v97_v3 }
  0x80   :  { %v50_v52 = vpop.xlane.xlu0 %49  ;;  %v56_v53 = vpop.xlane.xlu1 %55 }
  0x81   :  { %v412_v54 = vpop.eup %411  ;;  %v94_v55 = vmax.f32 %v50_v52, 1e-24  ;;  %v96_v57 = vmax.f32 %v56_v53, 1e-24  ;;  %v62_v12 = vpop.xlane.xlu2 %61 }
  0x82   :  { %v110_v56 = vmul.f32 %v412_v54, %v93_v50  ;;  %v414_v59 = vpop.eup %413  ;;  %vm116_vm1 = vweird.f32 %v412_v54  ;;  %v98_v14 = vmax.f32 %v62_v12, 1e-24 }
  0x83   :  { %415 = vrsqrt.f32 %v94_v55  ;;  %v130_v62 = vmul.f32 %v414_v59, %v95_v51  ;;  %vm117_vm3 = vmor %vm115_vm2, %vm116_vm1  ;;  %vm125_vm5 = vweird.f32 %v94_v55  ;;  %vm136_vm8 = vweird.f32 %v414_v59 }
  0x84   :  { %v111_v58 = vmul.f32 %v412_v54, %v110_v56  ;;  %417 = vrsqrt.f32 %v96_v57  ;;  %vm137_vm9 = vmor %vm135_vm7, %vm136_vm8  ;;  %vm145_vm10 = vweird.f32 %v96_v57  ;;  %vm165_vm0 = vweird.f32 %v98_v14 }
  0x85   :  { %v131_v4 = vmul.f32 %v414_v59, %v130_v62  ;;  %419 = vrsqrt.f32 %v97_v3 }
  0x86   :  { %v112_v61 = vmul.f32 0.5, %v111_v58  ;;  %421 = vrsqrt.f32 %v98_v14 }
  0x87   :  { %v132_v9 = vmul.f32 0.5, %v131_v4 }
  0x88   :  { %v113_v63 = vsub.f32 1.5, %v112_v61  ;;  %v65_v22 = vpop.xlane.xlu0 %64  ;;  %v68_v31 = vpop.xlane.xlu1 %67 }
  0x89   :  { %v416_v0 = vpop.eup %415  ;;  %v133_v15 = vsub.f32 1.5, %v132_v9  ;;  %v99_v24 = vmax.f32 %v65_v22, 1e-24  ;;  %v100_v33 = vmax.f32 %v68_v31, 1e-24  ;;  %v71_v40 = vpop.xlane.xlu2 %70 }
  0x8a   :  { %v120_v1 = vmul.f32 %v416_v0, %v94_v55  ;;  %v114_v2 = vmul.f32 %v412_v54, %v113_v63  ;;  %v418_v7 = vpop.eup %417  ;;  %vm126_vm4 = vweird.f32 %v416_v0  ;;  %v101_v42 = vmax.f32 %v71_v40, 1e-24 }
  0x8b   :  { %v140_v11 = vmul.f32 %v418_v7, %v96_v57  ;;  %vm127_vm6 = vmor %vm125_vm5, %vm126_vm4  ;;  %v420_v18 = vpop.eup %419  ;;  %v134_v23 = vmul.f32 %v414_v59, %v133_v15  ;;  %vm146_vm11 = vweird.f32 %v418_v7  ;;  %423 = vrsqrt.f32 %v99_v24 }
  0x8c   :  { %v121_v5 = vmul.f32 %v416_v0, %v120_v1  ;;  %v118_v6 = vsel %vm117_vm3, %v412_v54, %v114_v2  ;;  %v150_v21 = vmul.f32 %v420_v18, %v97_v3  ;;  %v422_v28 = vpop.eup %421  ;;  %vm147_vm12 = vmor %vm145_vm10, %vm146_vm11  ;;  %vm156_vm14 = vweird.f32 %v420_v18 }
  0x8d   :  { %341 = vxpose.xlu1.b32.start [1/16] (narrow) %v118_v6, 8  ;;  %v141_v16 = vmul.f32 %v418_v7, %v140_v11  ;;  %v138_v27 = vsel %vm137_vm9, %v414_v59, %v134_v23  ;;  %v160_v30 = vmul.f32 %v422_v28, %v98_v14  ;;  %425 = vrsqrt.f32 %v100_v33  ;;  %vm157_vm15 = vmor %vm155_vm13, %vm156_vm14 }
  0x8e   :  { %v122_v8 = vmul.f32 0.5, %v121_v5  ;;  %v151_v26 = vmul.f32 %v420_v18, %v150_v21  ;;  %vm166_vm1 = vweird.f32 %v422_v28  ;;  %427 = vrsqrt.f32 %v101_v42 }
  0x8f   :  { %v142_v20 = vmul.f32 0.5, %v141_v16  ;;  %v161_v35 = vmul.f32 %v422_v28, %v160_v30  ;;  %vm167_vm2 = vmor %vm165_vm0, %vm166_vm1  ;;  %vm175_vm3 = vweird.f32 %v99_v24  ;;  %vm195_vm9 = vweird.f32 %v101_v42 }
  0x90   :  { %v123_v10 = vsub.f32 1.5, %v122_v8  ;;  %v152_v29 = vmul.f32 0.5, %v151_v26  ;;  %v74_v49 = vpop.xlane.xlu0 %73  ;;  %v77_v58 = vpop.xlane.xlu1 %76 }
  0x91   :  { %v143_v25 = vsub.f32 1.5, %v142_v20  ;;  %v424_v37 = vpop.eup %423  ;;  %v162_v38 = vmul.f32 0.5, %v161_v35  ;;  %v102_v51 = vmax.f32 %v74_v49, 1e-24  ;;  %v103_v60 = vmax.f32 %v77_v58, 1e-24  ;;  %v80_v3 = vpop.xlane.xlu2 %79 }
  0x92   :  { %v124_v13 = vmul.f32 %v416_v0, %v123_v10  ;;  %v153_v34 = vsub.f32 1.5, %v152_v29  ;;  %v170_v39 = vmul.f32 %v424_v37, %v99_v24  ;;  %vm176_vm4 = vweird.f32 %v424_v37 }
  0x93   :  { %v144_v32 = vmul.f32 %v418_v7, %v143_v25  ;;  %v163_v43 = vsub.f32 1.5, %v162_v38  ;;  %v426_v46 = vpop.eup %425  ;;  %429 = vrsqrt.f32 %v102_v51  ;;  %vm177_vm5 = vmor %vm175_vm3, %vm176_vm4  ;;  %v104_v5 = vmax.f32 %v80_v3, 1e-24 }
  0x94   :  { %v128_v17 = vsel %vm127_vm6, %v416_v0, %v124_v13  ;;  %v154_v41 = vmul.f32 %v420_v18, %v153_v34  ;;  %v171_v44 = vmul.f32 %v424_v37, %v170_v39  ;;  %v180_v48 = vmul.f32 %v426_v46, %v100_v33  ;;  %v428_v55 = vpop.eup %427 }
  0x95   :  { %342 = vxpose.xlu1.b32.cont [2/16] (narrow) %v128_v17, 8  ;;  %v148_v36 = vsel %vm147_vm12, %v418_v7, %v144_v32  ;;  %v164_v50 = vmul.f32 %v422_v28, %v163_v43  ;;  %v190_v57 = vmul.f32 %v428_v55, %v101_v42  ;;  %vm185_vm6 = vweird.f32 %v100_v33 }
  0x96   :  { %v158_v45 = vsel %vm157_vm15, %v420_v18, %v154_v41  ;;  %v172_v47 = vmul.f32 0.5, %v171_v44  ;;  %v181_v53 = vmul.f32 %v426_v46, %v180_v48  ;;  %vm186_vm7 = vweird.f32 %v426_v46 }
  0x97   :  { %v168_v54 = vsel %vm167_vm2, %v422_v28, %v164_v50  ;;  %v191_v62 = vmul.f32 %v428_v55, %v190_v57  ;;  %431 = vrsqrt.f32 %v103_v60  ;;  %vm187_vm8 = vmor %vm185_vm6, %vm186_vm7  ;;  %vm196_vm10 = vweird.f32 %v428_v55 }
  0x98   :  { %v173_v52 = vsub.f32 1.5, %v172_v47  ;;  %v182_v56 = vmul.f32 0.5, %v181_v53  ;;  %433 = vrsqrt.f32 %v104_v5  ;;  %v83_v12 = vpop.xlane.xlu0 %82  ;;  %vm197_vm11 = vmor %vm195_vm9, %vm196_vm10  ;;  %vm205_vm12 = vweird.f32 %v102_v51  ;;  %v86_v20 = vpop.xlane.xlu1 %85 }
  0x99   :  { %v430_v0 = vpop.eup %429  ;;  %v192_v1 = vmul.f32 0.5, %v191_v62  ;;  %v105_v14 = vmax.f32 %v83_v12, 1e-24  ;;  %v106_v23 = vmax.f32 %v86_v20, 1e-24  ;;  %vm215_vm15 = vweird.f32 %v103_v60  ;;  %v89_v30 = vpop.xlane.xlu2 %88 }
  0x9a   :  { %v174_v59 = vmul.f32 %v424_v37, %v173_v52  ;;  %v183_v61 = vsub.f32 1.5, %v182_v56  ;;  %v200_v2 = vmul.f32 %v430_v0, %v102_v51  ;;  %vm206_vm13 = vweird.f32 %v430_v0 }
  0x9b   :  { %v193_v6 = vsub.f32 1.5, %v192_v1  ;;  %435 = vrsqrt.f32 %v105_v14  ;;  %vm207_vm14 = vmor %vm205_vm12, %vm206_vm13  ;;  %v107_v32 = vmax.f32 %v89_v30, 1e-24  ;;  %vm225_vm2 = vweird.f32 %v104_v5 }
  0x9c   :  { %v178_v63 = vsel %vm177_vm5, %v424_v37, %v174_v59  ;;  %v184_v4 = vmul.f32 %v426_v46, %v183_v61  ;;  %v201_v7 = vmul.f32 %v430_v0, %v200_v2  ;;  %437 = vrsqrt.f32 %v106_v23 }
  0x9d   :  { %343 = vxpose.xlu1.b32.cont [3/16] (narrow) %v138_v27, 8  ;;  %v432_v9 = vpop.eup %431  ;;  %v194_v13 = vmul.f32 %v428_v55, %v193_v6  ;;  %439 = vrsqrt.f32 %v107_v32  ;;  %vm235_vm5 = vweird.f32 %v105_v14 }
  0x9e   :  { %v188_v8 = vsel %vm187_vm8, %v426_v46, %v184_v4  ;;  %v210_v10 = vmul.f32 %v432_v9, %v103_v60  ;;  %v202_v11 = vmul.f32 0.5, %v201_v7  ;;  %v434_v18 = vpop.eup %433  ;;  %vm216_vm0 = vweird.f32 %v432_v9 }
  0x9f   :  { %v198_v17 = vsel %vm197_vm11, %v428_v55, %v194_v13  ;;  %v220_v21 = vmul.f32 %v434_v18, %v104_v5  ;;  %vm217_vm1 = vmor %vm215_vm15, %vm216_vm0  ;;  %vm226_vm3 = vweird.f32 %v434_v18  ;;  %vm245_vm8 = vweird.f32 %v106_v23 }
  0xa0   :  { %v211_v15 = vmul.f32 %v432_v9, %v210_v10  ;;  %v203_v16 = vsub.f32 1.5, %v202_v11  ;;  %v92_v39 = vpop.xlane.xlu0 %91  ;;  %vm227_vm4 = vmor %vm225_vm2, %vm226_vm3  ;;  %vm255_vm11 = vweird.f32 %v107_v32 }
  0xa1   :  { %v221_v25 = vmul.f32 %v434_v18, %v220_v21  ;;  %v436_v27 = vpop.eup %435  ;;  %v108_v41 = vmax.f32 %v92_v39, 1e-24 }
  0xa2   :  { %v212_v19 = vmul.f32 0.5, %v211_v15  ;;  %v204_v22 = vmul.f32 %v430_v0, %v203_v16  ;;  %v230_v29 = vmul.f32 %v436_v27, %v105_v14  ;;  %vm236_vm6 = vweird.f32 %v436_v27 }
  0xa3   :  { %v222_v28 = vmul.f32 0.5, %v221_v25  ;;  %441 = vrsqrt.f32 %v108_v41  ;;  %vm237_vm7 = vmor %vm235_vm5, %vm236_vm6 }
  0xa4   :  { %v213_v24 = vsub.f32 1.5, %v212_v19  ;;  %v208_v26 = vsel %vm207_vm14, %v430_v0, %v204_v22  ;;  %v231_v34 = vmul.f32 %v436_v27, %v230_v29  ;;  %vm265_vm14 = vweird.f32 %v108_v41 }
  0xa5   :  { %344 = vxpose.xlu1.b32.cont [4/16] (narrow) %v148_v36, 8  ;;  %v223_v33 = vsub.f32 1.5, %v222_v28  ;;  %v438_v36 = vpop.eup %437 }
  0xa6   :  { %v214_v31 = vmul.f32 %v432_v9, %v213_v24  ;;  %v240_v37 = vmul.f32 %v438_v36, %v106_v23  ;;  %v232_v38 = vmul.f32 0.5, %v231_v34  ;;  %vm246_vm9 = vweird.f32 %v438_v36 }
  0xa7   :  { %v224_v40 = vmul.f32 %v434_v18, %v223_v33  ;;  %vm247_vm10 = vmor %vm245_vm8, %vm246_vm9 }
  0xa8   :  { %v218_v35 = vsel %vm217_vm1, %v432_v9, %v214_v31  ;;  %v241_v42 = vmul.f32 %v438_v36, %v240_v37  ;;  %v233_v43 = vsub.f32 1.5, %v232_v38 }
  0xa9   :  { %v228_v44 = vsel %vm227_vm4, %v434_v18, %v224_v40 }
  0xaa   :  { %v242_v46 = vmul.f32 0.5, %v241_v42  ;;  %v234_v48 = vmul.f32 %v436_v27, %v233_v43 }
  0xac   :  { %v243_v49 = vsub.f32 1.5, %v242_v46  ;;  %v238_v51 = vsel %vm237_vm7, %v436_v27, %v234_v48 }
  0xad   :  { %345 = vxpose.xlu1.b32.cont [5/16] (narrow) %v158_v45, 8  ;;  %v440_v45 = vpop.eup %439 }
  0xae   :  { %v250_v47 = vmul.f32 %v440_v45, %v107_v32  ;;  %v442_v52 = vpop.eup %441  ;;  %v244_v55 = vmul.f32 %v438_v36, %v243_v49  ;;  %vm256_vm12 = vweird.f32 %v440_v45 }
  0xaf   :  { %vm257_vm13 = vmor %vm255_vm11, %vm256_vm12  ;;  %vm266_vm15 = vweird.f32 %v442_v52 }
  0xb0   :  { %v251_v50 = vmul.f32 %v440_v45, %v250_v47  ;;  %v248_v58 = vsel %vm247_vm10, %v438_v36, %v244_v55  ;;  %vm267_vm0 = vmor %vm265_vm14, %vm266_vm15 }
  0xb2   :  { %v252_v53 = vmul.f32 0.5, %v251_v50 }
  0xb4   :  { %v253_v56 = vsub.f32 1.5, %v252_v53 }
  0xb5   :  { %346 = vxpose.xlu1.b32.cont [6/16] (narrow) %v168_v54, 8  ;;  %v260_v54 = vmul.f32 %v442_v52, %v108_v41 }
  0xb6   :  { %v254_v60 = vmul.f32 %v440_v45, %v253_v56 }
  0xb7   :  { %v261_v57 = vmul.f32 %v442_v52, %v260_v54 }
  0xb8   :  { %v258_v62 = vsel %vm257_vm13, %v440_v45, %v254_v60 }
  0xb9   :  { %v262_v59 = vmul.f32 0.5, %v261_v57 }
  0xbb   :  { %v263_v61 = vsub.f32 1.5, %v262_v59 }
  0xbd   :  { %347 = vxpose.xlu1.b32.cont [7/16] (narrow) %v178_v63, 8  ;;  %v264_v63 = vmul.f32 %v442_v52, %v263_v61 }
  0xbf   :  { %v268_v0 = vsel %vm267_vm0, %v442_v52, %v264_v63 }
  0xc3   :  { %v338_v3 = vpop.f32.mrf.mxu0 }
  0xc5   :  { %348 = vxpose.xlu1.b32.cont [8/16] (narrow) %v188_v8, 8 }
  0xcd   :  { %349 = vxpose.xlu1.b32.cont [9/16] (narrow) %v198_v17, 8 }
  0xd5   :  { %350 = vxpose.xlu1.b32.cont [10/16] (narrow) %v208_v26, 8 }
  0xdd   :  { %351 = vxpose.xlu1.b32.cont [11/16] (narrow) %v218_v35, 8 }
  0xe5   :  { %352 = vxpose.xlu1.b32.cont [12/16] (narrow) %v228_v44, 8 }
  0xed   :  { %353 = vxpose.xlu1.b32.cont [13/16] (narrow) %v238_v51, 8 }
  0xf5   :  { %354 = vxpose.xlu1.b32.cont [14/16] (narrow) %v248_v58, 8 }
  0xfd   :  { %355 = vxpose.xlu1.b32.cont [15/16] (narrow) %v258_v62, 8 }
 0x105   :  { %356 = vxpose.xlu1.b32.end [16/16] (narrow) %v268_v0, 8 }
 0x131   :  { %v357_v1 = vpop.trf.xlu1 }
 0x132   :  { %v373_v2 = vmul.f32 30.0, %v357_v1 }
 0x134   :  { %v374_v4 = vperm.slane %v373_v2, 0 }
 0x136   :  { %v375_v5 = vmul.f32 %v374_v4, %v338_v3 }
 0x138   :  { %376 = vst [vmem:[#allocation2] sm:$0xff] %v375_v5 }
 0x139   :  { %387 = dma.vmem_to_hbm [thread:$0]  %s383_s14, 128, %s385_s17, [#allocation3]  }
 0x13a   :  { %467 = dma.done.wait [#allocation3], 128  }
 0x13b   :  { %468 = vsyncadd [#allocation3], 4294967168 }
 0x13c   :  { %392 = vsyncpa [#allocation3], 1 }

</bundles_post_ra>
